<compile_context>
chip_gen: v7x
topology: tpu7x:2x2x1
jax: 0.10.0
libtpu: 0.0.40
codegen_flags: <defaults>
</compile_context>

<pallas_src>
import jax
import jax.numpy as jnp
from jax.experimental import pallas as pl
from jax.experimental.pallas import tpu as pltpu


# --------------------------------------------------------------------------
# Budget / tiling helpers
# --------------------------------------------------------------------------
def _vmem_budgets():
    """(per-input-buffer budget, default vmem limit, physical VMEM) per generation."""
    try:
        cap = int(pltpu.get_tpu_info().vmem_capacity_bytes)
    except Exception:
        cap = 64 * 1024 * 1024                       # conservative (v7x-sized) fallback
    if cap >= 100 * 1024 * 1024:                     # v5e / v6e: 128 MiB physical VMEM
        return 40 * 1024 * 1024, 96 * 1024 * 1024, cap
    return 22 * 1024 * 1024, 50 * 1024 * 1024, cap   # v7x: 64 MiB physical VMEM


def _pick_hw_tile(hw, c, itemsize, per_buffer_bytes):
    """Largest lane-axis tile satisfying the (8,128) constraint under the budget."""
    if hw <= 128 or c * hw * itemsize <= per_buffer_bytes:
        return hw                                    # full extent: always legal
    max_lanes = (per_buffer_bytes // (c * itemsize)) // 128 * 128
    return max(128, int(max_lanes))                  # 128-lane floor for huge C


def _pick_channel_split(batch, channels):
    """Channel-group factor G so the 'parallel' grid axis has >= 2 balanced cells.

    On v7x a single TensorCore cannot saturate chip HBM bandwidth, so for B==1
    (or odd B) we split channels across two independent grid cells. Harmless on
    single-core chips (one extra tiny pipeline)."""
    if batch % 2 == 1 and channels % 2 == 0 and channels >= 16:
        return 2
    return 1


# --------------------------------------------------------------------------
# Stage 1: streaming global avg+max pooling over HW
# --------------------------------------------------------------------------
def _make_pool_kernel(hw_total, hw_tile):
    ragged = (hw_total % hw_tile) != 0

    def kernel(x_ref, o_ref, sum_ref, max_ref):
        k = pl.program_id(1)
        last = pl.num_programs(1) - 1

        @pl.when(k == 0)
        def _init():
            sum_ref[...] = jnp.zeros_like(sum_ref)
            max_ref[...] = jnp.full_like(max_ref, -jnp.inf)

        x_raw = x_ref[0]                              # (Cg, hw_tile), input dtype

        def _accumulate(xv):
            # Sum accumulates in f32; the heavy max reduce stays in the input
            # dtype (exact for floats) and is widened once per step.
            sum_ref[...] += jnp.sum(xv.astype(jnp.float32), axis=1, keepdims=True)
            max_ref[...] = jnp.maximum(
                max_ref[...],
                jnp.max(xv, axis=1, keepdims=True).astype(jnp.float32))

        if ragged:
            # Hot loop stays mask-free; only the final (partial) tile is masked.
            @pl.when(k < last)
            def _full_tile():
                _accumulate(x_raw)

            @pl.when(k == last)
            def _partial_tile():
                lane = jax.lax.broadcasted_iota(jnp.int32, x_raw.shape, 1)
                valid = (k * hw_tile + lane) < hw_total
                xf = x_raw.astype(jnp.float32)
                sum_ref[...] += jnp.sum(jnp.where(valid, xf, 0.0),
                                        axis=1, keepdims=True)
                max_ref[...] = jnp.maximum(
                    max_ref[...],
                    jnp.max(jnp.where(valid, xf, -jnp.inf),
                            axis=1, keepdims=True))
        else:
            _accumulate(x_raw)

        @pl.when(k == last)
        def _emit():
            # Pack (sum, max) as the two lane columns of the (Cg, 2) output block.
            col = jax.lax.broadcasted_iota(jnp.int32, (sum_ref.shape[0], 2), 1)
            o_ref[0] = jnp.where(col == 0, sum_ref[...], max_ref[...])

    return kernel


# --------------------------------------------------------------------------
# Stage 2: shared FC (both 1x1 convs) + sigmoid, once per batch element
# --------------------------------------------------------------------------
def _make_fc_kernel(hw_total):
    inv_hw = 1.0 / float(hw_total)

    def kernel(pooled_ref, w1_ref, w2_ref, o_ref):
        p = pooled_ref[0]                                         # (C, 2) f32: [sum, max]
        col = jax.lax.broadcasted_iota(jnp.int32, p.shape, 1)
        p = jnp.where(col == 0, p * inv_hw, p)                    # -> [avg, max]
        w1 = w1_ref[...].astype(jnp.float32)                      # (hidden, C)
        w2 = w2_ref[...].astype(jnp.float32)                      # (C, hidden)
        h = jnp.maximum(jnp.dot(w1, p, preferred_element_type=jnp.float32), 0.0)
        y = jnp.dot(w2, h, preferred_element_type=jnp.float32)    # (C, 2)
        o_ref[0] = jax.nn.sigmoid(y[:, 0:1] + y[:, 1:2]).astype(o_ref.dtype)

    return kernel


# --------------------------------------------------------------------------
# Wrapper
# --------------------------------------------------------------------------
def channel_attention(x, w1, w2, *, hw_tile=None, vmem_limit_bytes=None):
    """SARNet ChannelAttention forward.

    Args:
      x:  (B, C, H, W) NCHW input (floating dtype).
      w1: (hidden, C) -- PyTorch fc[0].weight.reshape(hidden, C)  (1x1 conv, no bias)
      w2: (C, hidden) -- PyTorch fc[2].weight.reshape(C, hidden)  (1x1 conv, no bias)
    Returns:
      (B, C, 1, 1) sigmoid attention weights, dtype of x.
    """
    B, C, H, W = x.shape
    hidden, c1 = w1.shape
    assert c1 == C and w2.shape == (C, hidden), (w1.shape, w2.shape)
    assert jnp.issubdtype(x.dtype, jnp.floating), x.dtype
    hw = H * W
    itemsize = jnp.dtype(x.dtype).itemsize

    G = _pick_channel_split(B, C)
    Cg = C // G
    BG = B * G

    per_buf, default_limit, cap = _vmem_budgets()
    if hw_tile is None:
        hw_tile = _pick_hw_tile(hw, Cg, itemsize, per_buf)
    if hw_tile >= hw:
        hw_tile = hw                                  # full-extent block: always legal
    assert hw_tile == hw or hw_tile % 128 == 0, hw_tile
    num_k = pl.cdiv(hw, hw_tile)

    if vmem_limit_bytes is None:
        needed = 2 * Cg * hw_tile * itemsize + (2 << 20)   # double-buffered input + slack
        vmem_limit_bytes = int(min(max(default_limit, needed), cap))

    x3 = x.reshape(BG, Cg, hw)     # contiguous view: no extra HBM pass / no transpose

    pool_cost = pl.CostEstimate(
        flops=2 * B * C * hw,
        transcendentals=0,
        bytes_accessed=x3.size * itemsize + BG * Cg * 2 * 4,
    )

    pooled = pl.pallas_call(
        _make_pool_kernel(hw, hw_tile),
        out_shape=jax.ShapeDtypeStruct((BG, Cg, 2), jnp.float32),
        grid_spec=pltpu.PrefetchScalarGridSpec(
            num_scalar_prefetch=0,
            grid=(BG, num_k),
            in_specs=[pl.BlockSpec((1, Cg, hw_tile), lambda bg, k: (bg, 0, k))],
            out_specs=pl.BlockSpec((1, Cg, 2), lambda bg, k: (bg, 0, 0)),
            scratch_shapes=[
                pltpu.VMEM((Cg, 1), jnp.float32),   # running sum
                pltpu.VMEM((Cg, 1), jnp.float32),   # running max
            ],
        ),
        compiler_params=pltpu.CompilerParams(
            dimension_semantics=("parallel", "arbitrary"),
            vmem_limit_bytes=vmem_limit_bytes,
        ),
        cost_estimate=pool_cost,
    )(x3)

    pooled = pooled.reshape(B, C, 2)   # regroup channel splits (contiguous view)

    out = pl.pallas_call(
        _make_fc_kernel(hw),
        out_shape=jax.ShapeDtypeStruct((B, C, 1), x.dtype),
        grid_spec=pltpu.PrefetchScalarGridSpec(
            num_scalar_prefetch=0,
            grid=(B,),
            in_specs=[
                pl.BlockSpec((1, C, 2), lambda b: (b, 0, 0)),
                pl.BlockSpec((hidden, C), lambda b: (0, 0)),
                pl.BlockSpec((C, hidden), lambda b: (0, 0)),
            ],
            out_specs=pl.BlockSpec((1, C, 1), lambda b: (b, 0, 0)),
        ),
        compiler_params=pltpu.CompilerParams(
            dimension_semantics=("parallel",),
        ),
    )(pooled, w1, w2)

    return out.reshape(B, C, 1, 1)


# --------------------------------------------------------------------------
# Pure-JAX reference (mirrors the PyTorch forward, weights in PyTorch layout)
# --------------------------------------------------------------------------
def channel_attention_ref(x, w1, w2):
    xf = x.astype(jnp.float32)
    avg = jnp.mean(xf, axis=(2, 3))   # (B, C)
    mx = jnp.max(xf, axis=(2, 3))     # (B, C)

    def fc(v):
        return jnp.maximum(v @ w1.astype(jnp.float32).T, 0.0) @ w2.astype(jnp.float32).T

    out = jax.nn.sigmoid(fc(avg) + fc(mx))
    return out.reshape(x.shape[0], x.shape[1], 1, 1).astype(x.dtype)


if __name__ == "__main__":
    key = jax.random.PRNGKey(0)
    kx, k1, k2, kx2, kx3 = jax.random.split(key, 5)

    B, C, ratio = 2, 32, 8
    hidden = max(1, C // ratio)

    # Deterministic stand-ins for the PyTorch 1x1-conv weights (natural layout).
    w1 = jax.random.normal(k1, (hidden, C), dtype=jnp.float32) * (1.0 / C) ** 0.5
    w2 = jax.random.normal(k2, (C, hidden), dtype=jnp.float32) * (1.0 / hidden) ** 0.5

    # Case 1: 16x16 spatial, auto tile (single block over HW).
    x = jax.random.normal(kx, (B, C, 16, 16), dtype=jnp.float32)
    out = jax.block_until_ready(channel_attention(x, w1, w2))
    ref = channel_attention_ref(x, w1, w2)
    assert out.shape == (B, C, 1, 1), out.shape
    assert jnp.allclose(out, ref, atol=1e-5, rtol=1e-5), "case1 mismatch vs reference"

    # Case 2: forced 128-lane tile -> multi-step accumulation over the HW axis.
    out2 = jax.block_until_ready(channel_attention(x, w1, w2, hw_tile=128))
    assert jnp.allclose(out2, ref, atol=1e-5, rtol=1e-5), "case2 mismatch vs reference"

    # Case 3: ragged spatial extent (12*12 = 144) -> masked final tile only.
    x3 = jax.random.normal(kx2, (B, C, 12, 12), dtype=jnp.float32)
    out3 = jax.block_until_ready(channel_attention(x3, w1, w2, hw_tile=128))
    ref3 = channel_attention_ref(x3, w1, w2)
    assert jnp.allclose(out3, ref3, atol=1e-5, rtol=1e-5), "case3 mismatch vs reference"

    # Case 4: B == 1 -> channel-split (G=2) path so both v7x TensorCores get work.
    x4 = jax.random.normal(kx3, (1, C, 16, 16), dtype=jnp.float32)
    out4 = jax.block_until_ready(channel_attention(x4, w1, w2))
    ref4 = channel_attention_ref(x4, w1, w2)
    assert out4.shape == (1, C, 1, 1), out4.shape
    assert jnp.allclose(out4, ref4, atol=1e-5, rtol=1e-5), "case4 mismatch vs reference"

    # Case 5: bf16 input -> max reduce stays in bf16, sum accumulates in f32.
    xb = x.astype(jnp.bfloat16)
    outb = jax.block_until_ready(channel_attention(xb, w1, w2))
    refb = channel_attention_ref(xb, w1, w2)
    assert jnp.allclose(outb.astype(jnp.float32), refb.astype(jnp.float32),
                        atol=2e-2), "case5 mismatch vs reference"

    print("KERNEL_OK")
</pallas_src>

<mosaic_0001>
module attributes {stable_mosaic.version = 11 : i64} {
  func.func @kernel(%arg0: i32, %arg1: i32, %arg2: memref<1x32x256xf32, #tpu.memory_space<vmem>>, %arg3: memref<1x32x2xf32, #tpu.memory_space<vmem>>, %arg4: memref<32x1xf32, #tpu.memory_space<vmem>>, %arg5: memref<32x1xf32, #tpu.memory_space<vmem>>) attributes {dimension_semantics = [#tpu.dimension_semantics<parallel>, #tpu.dimension_semantics<arbitrary>], iteration_bounds = array<i64: 2, 1>, scalar_prefetch = 0 : i64, scratch_operands = 2 : i64, tpu.core_type = #tpu.core_type<tc>, window_params = [{transform_indices = @transform_0, window_bounds = array<i64: 1, 32, 256>}, {transform_indices = @transform_1, window_bounds = array<i64: 1, 32, 2>}]} {
    %c0_i32 = arith.constant 0 : i32
    %0 = arith.cmpi eq, %arg1, %c0_i32 : i32
    %1 = arith.extui %0 : i1 to i32
    %c0_i32_0 = arith.constant 0 : i32
    %2 = arith.cmpi ne, %1, %c0_i32_0 : i32
    scf.if %2 {
      %cst_14 = arith.constant 0.000000e+00 : f32
      %18 = vector.broadcast %cst_14 : f32 to vector<32x1xf32>
      %c0_15 = arith.constant 0 : index
      %c0_16 = arith.constant 0 : index
      %19 = vector.load %arg4[%c0_15, %c0_16] : memref<32x1xf32, #tpu.memory_space<vmem>>, vector<32x1xf32>
      tpu.vector_store %arg4[%c0_15, %c0_16], %18 {strides = array<i32>} : memref<32x1xf32, #tpu.memory_space<vmem>>, vector<32x1xf32>,
      %cst_17 = arith.constant 0xFF800000 : f32
      %20 = vector.broadcast %cst_17 : f32 to vector<32x1xf32>
      %c0_18 = arith.constant 0 : index
      %c0_19 = arith.constant 0 : index
      %21 = vector.load %arg5[%c0_18, %c0_19] : memref<32x1xf32, #tpu.memory_space<vmem>>, vector<32x1xf32>
      tpu.vector_store %arg5[%c0_18, %c0_19], %20 {strides = array<i32>} : memref<32x1xf32, #tpu.memory_space<vmem>>, vector<32x1xf32>,
    } else {
    }
    %c0 = arith.constant 0 : index
    %c0_1 = arith.constant 0 : index
    %c0_2 = arith.constant 0 : index
    %3 = vector.load %arg2[%c0, %c0_1, %c0_2] : memref<1x32x256xf32, #tpu.memory_space<vmem>>, vector<1x32x256xf32>
    %4 = vector.shape_cast %3 : vector<1x32x256xf32> to vector<32x256xf32>
    %c0_3 = arith.constant 0 : index
    %c0_4 = arith.constant 0 : index
    %5 = vector.load %arg4[%c0_3, %c0_4] : memref<32x1xf32, #tpu.memory_space<vmem>>, vector<32x1xf32>
    %cst = arith.constant dense<0.000000e+00> : vector<32xf32>
    %6 = vector.multi_reduction <add>, %4, %cst [1] : vector<32x256xf32> to vector<32xf32>
    %7 = vector.shape_cast %6 : vector<32xf32> to vector<32x1xf32>
    %8 = arith.addf %5, %7 : vector<32x1xf32>
    %c0_5 = arith.constant 0 : index
    %c0_6 = arith.constant 0 : index
    %9 = vector.load %arg4[%c0_5, %c0_6] : memref<32x1xf32, #tpu.memory_space<vmem>>, vector<32x1xf32>
    tpu.vector_store %arg4[%c0_5, %c0_6], %8 {strides = array<i32>} : memref<32x1xf32, #tpu.memory_space<vmem>>, vector<32x1xf32>,
    %c0_7 = arith.constant 0 : index
    %c0_8 = arith.constant 0 : index
    %10 = vector.load %arg5[%c0_7, %c0_8] : memref<32x1xf32, #tpu.memory_space<vmem>>, vector<32x1xf32>
    %cst_9 = arith.constant dense<0xFF800000> : vector<32xf32>
    %11 = vector.multi_reduction <maximumf>, %4, %cst_9 [1] : vector<32x256xf32> to vector<32xf32>
    %12 = vector.shape_cast %11 : vector<32xf32> to vector<32x1xf32>
    %13 = arith.maximumf %10, %12 : vector<32x1xf32>
    %c0_10 = arith.constant 0 : index
    %c0_11 = arith.constant 0 : index
    %14 = vector.load %arg5[%c0_10, %c0_11] : memref<32x1xf32, #tpu.memory_space<vmem>>, vector<32x1xf32>
    tpu.vector_store %arg5[%c0_10, %c0_11], %13 {strides = array<i32>} : memref<32x1xf32, #tpu.memory_space<vmem>>, vector<32x1xf32>,
    %c0_i32_12 = arith.constant 0 : i32
    %15 = arith.cmpi eq, %arg1, %c0_i32_12 : i32
    %16 = arith.extui %15 : i1 to i32
    %c0_i32_13 = arith.constant 0 : i32
    %17 = arith.cmpi ne, %16, %c0_i32_13 : i32
    scf.if %17 {
      %18 = tpu.iota {dimensions = array<i32: 1>} : vector<32x2xi32>
      %c0_i32_14 = arith.constant 0 : i32
      %19 = vector.broadcast %c0_i32_14 : i32 to vector<32x2xi32>
      %20 = arith.cmpi eq, %18, %19 : vector<32x2xi32>
      %c0_15 = arith.constant 0 : index
      %c0_16 = arith.constant 0 : index
      %21 = vector.load %arg4[%c0_15, %c0_16] : memref<32x1xf32, #tpu.memory_space<vmem>>, vector<32x1xf32>
      %c0_17 = arith.constant 0 : index
      %c0_18 = arith.constant 0 : index
      %22 = vector.load %arg5[%c0_17, %c0_18] : memref<32x1xf32, #tpu.memory_space<vmem>>, vector<32x1xf32>
      %23 = vector.shape_cast %21 : vector<32x1xf32> to vector<32x1xf32>
      %24 = vector.broadcast %23 : vector<32x1xf32> to vector<32x2xf32>
      %25 = vector.shape_cast %22 : vector<32x1xf32> to vector<32x1xf32>
      %26 = vector.broadcast %25 : vector<32x1xf32> to vector<32x2xf32>
      %27 = arith.select %20, %24, %26 : vector<32x2xi1>, vector<32x2xf32>
      %c0_19 = arith.constant 0 : index
      %c0_20 = arith.constant 0 : index
      %c0_21 = arith.constant 0 : index
      %28 = vector.load %arg3[%c0_19, %c0_20, %c0_21] : memref<1x32x2xf32, #tpu.memory_space<vmem>>, vector<1x32x2xf32>
      %29 = vector.shape_cast %28 : vector<1x32x2xf32> to vector<32x2xf32>
      %30 = vector.shape_cast %27 : vector<32x2xf32> to vector<1x32x2xf32>
      tpu.vector_store %arg3[%c0_19, %c0_20, %c0_21], %30 {strides = array<i32>} : memref<1x32x2xf32, #tpu.memory_space<vmem>>, vector<1x32x2xf32>,
    } else {
    }
    return
  }
  func.func @transform_0(%arg0: i32, %arg1: i32) -> (i32, i32, i32) {
    %c0_i32 = arith.constant 0 : i32
    %c0_i32_0 = arith.constant 0 : i32
    return %arg0, %c0_i32, %arg1 : i32, i32, i32
  }
  func.func @transform_1(%arg0: i32, %arg1: i32) -> (i32, i32, i32) {
    %c0_i32 = arith.constant 0 : i32
    %c0_i32_0 = arith.constant 0 : i32
    %c0_i32_1 = arith.constant 0 : i32
    return %arg0, %c0_i32, %c0_i32_0 : i32, i32, i32
  }
}

</mosaic_0001>

<bundles_post_ra>
// kernel: tpu_custom_call.1
= control target key start
LH: loop header
LB: loop body
LE: loop exit
PB: predicated region body
PF: predicated region fallthrough
CT: control target
= control target key end

     0   :  { %6 = vsyncpa [#allocation5], 0  ;;  %s680_s0 = inlined_call_operand.hbm [shape: f32[2,32,256], index: 0, kind: input, shape index: {}]   ;;  %s681_s1 = inlined_call_operand.vmem [shape: f32[2,32,2], index: 1, kind: output, shape index: {}]  }
   0x1   :  { %8 = vsyncpa [#allocation5 + $0x1], 0  ;;  %s540_s6 = smov 0   ;;  %s542_s7 = smov 0  }
   0x2   :  { %s544_s8 = smov 0   ;;  %s546_s9 = smov 0  }
   0x3   :  { %s548_s10 = smov 0   ;;  %s550_s11 = smov 0  }
   0x4 LB: > { %s365_s12 = sadd.s32 4294967295, %s522_s11   ;;  %s26_s13 = sadd.s32 1, %s518_s10  ;;  %s522_s11 = sphi %s550_s11, %s14_s11   ;;  %s518_s10 = sphi %s548_s10, %s689_s10   ;;  %s514_s9 = sphi %s546_s9, %s688_s9   ;;  %s510_s8 = sphi %s544_s8, %s687_s8   ;;  %s506_s7 = sphi %s542_s7, %s686_s7   ;;  %s502_s6 = sphi %s540_s6, %s685_s6  }
   0x5   : > { %p28_p0 = scmp.ge.s32.totalorder %s26_s13, 2  ;;  %s35_s14 = sadd.s32 1, %s510_s8 }
   0x6   : > { %p42_p1 = scmp.ne.s32.totalorder %s510_s8, %s506_s7  ;;  %p43_p2 = scmp.eq.s32.totalorder %s522_s11, 0 }
   0x7   : > { %s691_s13 = smov (%p28_p0, %s26_s13), 0  ;;  %p48_p4 = scmp.ne.s32.totalorder %s506_s7, %s502_s6 }
   0x8   : > { %p576_p3 = por %p43_p2, %p42_p1  ;;  %s30_s16 = ssub.s32 %s518_s10, %s691_s13 }
   0x9   : > { %p49_p5 = scmp.eq.s32.totalorder %s365_s12, 0  ;;  %p33_p6 = scmp.eq.s32.totalorder %s30_s16, 0 }
   0xa   : > { %p386_p8 = scmp.lt.s32.totalorder %s522_s11, 2  ;;  %s98_s19 = sand.u32 1, %s510_s8  }
   0xb   : > { %p583_p7 = por %p49_p5, %p48_p4  ;;  %s378_s20 = sshll.u32 %s518_s10, 10 }
   0xc   : > { %s589_s18 = scalar_select %p33_p6, %s510_s8, %s35_s14  }
   0xd   : > { %s369_s21 = sshll.u32 %s98_s19, 6  ;;  %s596_s24 = scalar_lea.hbm %s680_s0, %s378_s20 }
   0xe   : > { %s102_s25 = scalar_lea.vmem [#allocation4], %s369_s21  ;;  %p600_p9 = pnand %p386_p8, %p576_p3 }
   0xf   : > { %s111_s26 = sshll.u32 %s102_s25, 4  ;;  %s606_s28 = scalar_lea.sflag [#allocation5], %s98_s19  ;;  %s604_s26 = int_to_ptr.vmem [resolvable:$true] %s111_s26 }
  0x10   : > { %s442_s29 = scalar_lea.hbm %s596_s24, 1024  ;;  %p444_p11 = pneg %p600_p9 }
  0x11   : > { %p443_p10 = scmp.ne.s32.totalorder %s596_s24, %s442_s29  ;;  %s447_s3 = scalar_lea.hbm %s680_s0, 2048 }
  0x12   : > { %p448_p0 = scmp.lt.u32.totalorder %s596_s24, %s680_s0  ;;  %p449_p1 = scmp.lt.u32.totalorder %s447_s3, %s442_s29 }
  0x13   : > { %p445_p12 = pnand %p444_p11, %p443_p10  ;;  %p451_p3 = scmp.lt.u32.totalorder %s442_s29, %s596_s24 }
  0x14   : > { %p450_p2 = por %p449_p1, %p448_p0 }
  0x15   : > { %p446_p13 = pneg %p445_p12 }
  0x16   : > { %p452_p4 = por %p451_p3, %p450_p2 }
  0x18   : > { %p453_p5 = pnand %p452_p4, %p446_p13 }
  0x1a   : > { %456 = shalt.err (!%p453_p5)
}
  0x1b   : > { %s457_s6 = scalar_lea.vmem %s604_s26, 1024  ;;  %s524_s12 = smov [#allocation4]  }
  0x1c   : > { %p458_p6 = scmp.ne.s32.totalorder %s604_s26, %s457_s6  ;;  %s462_s14 = sshll.u32 %s524_s12, 4  ;;  %s463_s14 = int_to_ptr.vmem [resolvable:$false] %s462_s14 }
  0x1d   : > { %s464_s15 = scalar_lea.vmem %s463_s14, 2048  ;;  %p465_p12 = scmp.lt.s32.totalorder %s604_s26, %s463_s14 }
  0x1e   : > { %p460_p8 = pnand %p458_p6, %p444_p11  ;;  %p466_p0 = scmp.lt.s32.totalorder %s464_s15, %s457_s6 }
  0x20   : > { %p461_p10 = pneg %p460_p8  ;;  %p467_p1 = por %p466_p0, %p465_p12 }
  0x22   : > { %p468_p2 = pnand %p467_p1, %p461_p10 }
  0x24   : > { %471 = shalt.err (!%p468_p2)
}
  0x25   : > { %s525_s16 = smov 256   ;;  %s526_s19 = smov 16  }
  0x26   : > { %385 = dma.hbm_to_vmem [thread:$0]  (!%p600_p9), %s596_s24, 1024, %s604_s26, %s606_s28, %s525_s16, %s525_s16, %s526_s19  }
  0x27   : > { %p372_p11 = scmp.ge.s32.totalorder %s522_s11, 1  ;;  %p119_p13 = scmp.lt.s32.totalorder %s522_s11, 3 }
  0x29   : > { %p120_p3 = pnand %p372_p11, %p119_p13 }
  0x2a   : > { %s125_s20 = sand.u32 (!%p120_p3), 1, %s506_s7  }
  0x2b   : > { %123 = sbr.rel (%p120_p3) target bundleno = 364 (0x16c), region = 24  ;;  %s373_s21 = sshll.u32 (!%p120_p3), %s125_s20, 6 }
  0x2c   : > { %s126_s22 = scalar_lea.sflag (!%p120_p3), [#allocation5], %s125_s20  ;;  %s129_s23 = scalar_lea.vmem (!%p120_p3), [#allocation4], %s373_s21 }
  0x32   : > { %497 = dma.done.wait (%p583_p7), %s126_s22, 1024  }
  0x33   : > { %499 = vsyncadd (%p583_p7), %s126_s22, 4294966272  ;;  %vm158_vm0 = vcmask 7168   ;;  %v527_v0 = vmov 0.0   ;;  %v167_v1 = vld [vmem:[%s129_s23] sm:$0xff]  ;;  %v168_v2 = vld [vmem:[%s129_s23 + $0x8] sm:$0xff]  ;;  %v528_v17 = vmov 0   ;;  %v227_v52 = vlaneseq }
  0x34   : > { %159 = vst.msk [vmem:[#allocation2] sm:$0xff] %vm158_vm0, %v527_v0  ;;  %160 = vst.msk [vmem:[#allocation2 + $0x8] sm:$0xff] %vm158_vm0, %v527_v0  ;;  %v169_v3 = vld [vmem:[%s129_s23 + $0x10] sm:$0xff]  ;;  %v179_v4 = vadd.f32 %v168_v2, %v167_v1  ;;  %v170_v5 = vld [vmem:[%s129_s23 + $0x18] sm:$0xff]  ;;  %v204_v13 = vmax.f32 %v167_v1, %v168_v2  ;;  %440 = vset.pattern.permute.xlu0 %v528_v17  ;;  %441 = vset.pattern.permute.xlu1 %v528_v17  ;;  %v529_v18 = vmov -inf   ;;  %p149_p7 = scmp.lt.s32.totalorder %s514_s9, 1 }
  0x35   : > { %161 = vst.msk [vmem:[#allocation2 + $0x10] sm:$0xff] %vm158_vm0, %v527_v0  ;;  %162 = vst.msk [vmem:[#allocation2 + $0x18] sm:$0xff] %vm158_vm0, %v527_v0  ;;  %v171_v6 = vld [vmem:[%s129_s23 + $0x20] sm:$0xff]  ;;  %v172_v7 = vld [vmem:[%s129_s23 + $0x28] sm:$0xff]  ;;  %v182_v11 = vadd.f32 %v170_v5, %v169_v3  ;;  %v207_v14 = vmax.f32 %v169_v3, %v170_v5  ;;  %v228_v54 = vand.u32 127, %v227_v52  ;;  %vm282_vm2 = vcmask 15360  }
  0x36   : > { %v185_v8 = vadd.f32 %v172_v7, %v171_v6  ;;  %v173_v9 = vld [vmem:[%s129_s23 + $0x30] sm:$0xff]  ;;  %v174_v10 = vld [vmem:[%s129_s23 + $0x38] sm:$0xff]  ;;  %180 = vadd.xlane.f32.xlu0 %v179_v4  ;;  %v210_v15 = vmax.f32 %v171_v6, %v172_v7  ;;  %163 = vst.msk [vmem:[#allocation3] sm:$0xff] %vm158_vm0, %v529_v18  ;;  %164 = vst.msk [vmem:[#allocation3 + $0x8] sm:$0xff] %vm158_vm0, %v529_v18  ;;  %s693_s9 = smov (!%p149_p7, %s514_s9), 1 }
  0x37   : > { %v188_v12 = vadd.f32 %v174_v10, %v173_v9  ;;  %v213_v16 = vmax.f32 %v173_v9, %v174_v10  ;;  %165 = vst.msk [vmem:[#allocation3 + $0x10] sm:$0xff] %vm158_vm0, %v529_v18  ;;  %166 = vst.msk [vmem:[#allocation3 + $0x18] sm:$0xff] %vm158_vm0, %v529_v18  ;;  %s379_s17 = sshll.u32 %s693_s9, 5  ;;  %vm229_vm1 = vcmp.eq.s32.totalorder %v228_v54, 0 }
  0x38   : > { %186 = vadd.xlane.f32.xlu1 %v185_v8  ;;  %s153_s26 = scalar_lea.vmem %s681_s1, %s379_s17 }
  0x3a   : > { %183 = vadd.xlane.f32.xlu0 %v182_v11 }
  0x3b   : > { %v175_v19 = vld [vmem:[#allocation2] sm:$0xff]  ;;  %v176_v24 = vld [vmem:[#allocation2 + $0x8] sm:$0xff] }
  0x3c   : > { %189 = vadd.xlane.f32.xlu1 %v188_v12  ;;  %v177_v20 = vld [vmem:[#allocation2 + $0x10] sm:$0xff]  ;;  %v178_v26 = vld [vmem:[#allocation2 + $0x18] sm:$0xff] }
  0x3d   : > { %v200_v31 = vld [vmem:[#allocation3] sm:$0xff]  ;;  %v201_v32 = vld [vmem:[#allocation3 + $0x8] sm:$0xff] }
  0x3e   : > { %205 = vmax.xlane.f32.xlu0 %v204_v13  ;;  %v202_v38 = vld [vmem:[#allocation3 + $0x10] sm:$0xff]  ;;  %v203_v39 = vld [vmem:[#allocation3 + $0x18] sm:$0xff] }
  0x40   : > { %208 = vmax.xlane.f32.xlu1 %v207_v14 }
  0x42   : > { %211 = vmax.xlane.f32.xlu0 %v210_v15 }
  0x44   : > { %214 = vmax.xlane.f32.xlu1 %v213_v16 }
  0xc3   : > { %v181_v21 = vpop.xlane.xlu0 %180 }
  0xc4   : > { %v191_v22 = vadd.f32 %v181_v21, %v175_v19 }
  0xc5   : > { %v187_v23 = vpop.xlane.xlu1 %186 }
  0xc6   : > { %v193_v25 = vadd.f32 %v187_v23, %v177_v20  ;;  %196 = vst.msk [vmem:[#allocation2] sm:$0xff] %vm158_vm0, %v191_v22 }
  0xc7   : > { %v184_v27 = vpop.xlane.xlu0 %183 }
  0xc8   : > { %198 = vst.msk [vmem:[#allocation2 + $0x10] sm:$0xff] %vm158_vm0, %v193_v25  ;;  %v192_v28 = vadd.f32 %v184_v27, %v176_v24 }
  0xc9   : > { %v190_v29 = vpop.xlane.xlu1 %189 }
  0xca   : > { %v194_v30 = vadd.f32 %v190_v29, %v178_v26  ;;  %197 = vst.msk [vmem:[#allocation2 + $0x8] sm:$0xff] %vm158_vm0, %v192_v28 }
  0xcb   : > { %v206_v33 = vpop.xlane.xlu0 %205 }
  0xcc   : > { %199 = vst.msk [vmem:[#allocation2 + $0x18] sm:$0xff] %vm158_vm0, %v194_v30  ;;  %v216_v34 = vmax.f32 %v200_v31, %v206_v33 }
  0xcd   : > { %v209_v35 = vpop.xlane.xlu1 %208  ;;  %v230_v36 = vld [vmem:[#allocation2] sm:$0xff] }
  0xce   : > { %v217_v37 = vmax.f32 %v201_v32, %v209_v35  ;;  %240 = vperm.xlu0 %440, %v230_v36   ;;  %220 = vst.msk [vmem:[#allocation3] sm:$0xff] %vm158_vm0, %v216_v34 }
  0xcf   : > { %v212_v40 = vpop.xlane.xlu0 %211  ;;  %v232_v45 = vld [vmem:[#allocation2 + $0x10] sm:$0xff] }
  0xd0   : > { %221 = vst.msk [vmem:[#allocation3 + $0x8] sm:$0xff] %vm158_vm0, %v217_v37  ;;  %v218_v41 = vmax.f32 %v202_v38, %v212_v40 }
  0xd1   : > { %v215_v42 = vpop.xlane.xlu1 %214  ;;  %v231_v43 = vld [vmem:[#allocation2 + $0x8] sm:$0xff] }
  0xd2   : > { %v219_v44 = vmax.f32 %v203_v39, %v215_v42  ;;  %245 = vperm.xlu1 %441, %v231_v43   ;;  %222 = vst.msk [vmem:[#allocation3 + $0x10] sm:$0xff] %vm158_vm0, %v218_v41 }
  0xd3   : > { %v233_v46 = vld [vmem:[#allocation2 + $0x18] sm:$0xff] }
  0xd4   : > { %223 = vst.msk [vmem:[#allocation3 + $0x18] sm:$0xff] %vm158_vm0, %v219_v44 }
  0xd5   : > { %v234_v47 = vld [vmem:[#allocation3] sm:$0xff] }
  0xd6   : > { %250 = vperm.xlu1 %441, %v232_v45  }
  0xd7   : > { %v235_v48 = vld [vmem:[#allocation3 + $0x8] sm:$0xff] }
  0xd9   : > { %v236_v49 = vld [vmem:[#allocation3 + $0x10] sm:$0xff] }
  0xda   : > { %255 = vperm.xlu1 %441, %v233_v46  }
  0xdb   : > { %v237_v50 = vld [vmem:[#allocation3 + $0x18] sm:$0xff] }
  0xde   : > { %260 = vperm.xlu1 %441, %v234_v47  }
  0xe2   : > { %265 = vperm.xlu1 %441, %v235_v48  }
  0xe6   : > { %270 = vperm.xlu1 %441, %v236_v49  }
  0xea   : > { %275 = vperm.xlu1 %441, %v237_v50  }
 0x14d   : > { %v241_v56 = vpop.permute.xlu0 %240 }
 0x151   : > { %v246_v51 = vpop.permute.xlu1 %245 }
 0x155   : > { %v251_v53 = vpop.permute.xlu1 %250 }
 0x159   : > { %v256_v55 = vpop.permute.xlu1 %255 }
 0x15d   : > { %v261_v57 = vpop.permute.xlu1 %260 }
 0x15e   : > { %v278_v58 = vsel %vm229_vm1, %v241_v56, %v261_v57 }
 0x15f   : > { %283 = vst.msk [vmem:[%s153_s26] sm:$0xff] %vm282_vm2, %v278_v58 }
 0x161   : > { %v266_v59 = vpop.permute.xlu1 %265 }
 0x162   : > { %v279_v60 = vsel %vm229_vm1, %v246_v51, %v266_v59 }
 0x163   : > { %284 = vst.msk [vmem:[%s153_s26 + $0x8] sm:$0xff] %vm282_vm2, %v279_v60 }
 0x165   : > { %v271_v61 = vpop.permute.xlu1 %270 }
 0x166   : > { %v280_v62 = vsel %vm229_vm1, %v251_v53, %v271_v61 }
 0x167   : > { %285 = vst.msk [vmem:[%s153_s26 + $0x10] sm:$0xff] %vm282_vm2, %v280_v62 }
 0x169   : > { %v276_v63 = vpop.permute.xlu1 %275 }
 0x16a   : > { %v281_v0 = vsel %vm229_vm1, %v256_v55, %v276_v63 }
 0x16b   : > { %286 = vst.msk [vmem:[%s153_s26 + $0x18] sm:$0xff] %vm282_vm2, %v281_v0 }
 0x16c PF: > { %s14_s11 = sadd.s32 1, %s522_s11   ;;  %s685_s6 = smov %s506_s7 }
 0x16d   : > { %p11_p9 = scmp.ge.s32.totalorder %s14_s11, 4   ;;  %s686_s7 = smov %s510_s8 }
 0x16e   : > { %s687_s8 = smov %s589_s18  ;;  %s688_s9 = smov %s518_s10 }
 0x16f   : > { %s689_s10 = smov %s691_s13  ;;  %13 = sbr.rel (!%p11_p9) target bundleno = 4 (0x4), region = 72 }
 0x176   :  { %308 = vsyncpa [#allocation5], 1 }
 0x177   :  { %310 = vsyncpa [#allocation5 + $0x1], 1 }

</bundles_post_ra>
